<compile_context>
chip_gen: v7x
topology: tpu7x:2x2x1
jax: 0.10.0
libtpu: 0.0.40
codegen_flags: <defaults>
</compile_context>

<pallas_src>
import jax
import jax.numpy as jnp
from jax.experimental import pallas as pl
from jax.experimental.pallas import tpu as pltpu


def _round_up(n, m):
    return ((n + m - 1) // m) * m


def attention2_kernel(x_ref, wc_ref, wp_ref, out_ref, attn_ref):
    # x_ref:    (TB, C, L)   batch tile of the input
    # wc_ref:   (C, 1)       fc weights for the channel part (sublane-aligned)
    # wp_ref:   (1, L)       fc weights for the positional (identity) part, bias folded in
    # out_ref:  (TB, C, L)
    # attn_ref: (TB, L)
    x = x_ref[...]                                     # (TB, C, L)
    wc = wc_ref[...]                                   # (C, 1)
    wp = wp_ref[...]                                   # (1, L)

    # logits[b, l] = sum_c wc[c] * x[b, c, l] + (wp[l] + bias)
    # VPU multiply + XLU sublane reduce; no MXU involvement.
    logits = jnp.sum(x * wc[None, :, :], axis=1) + wp  # (TB, L)

    # Numerically stable softmax over L (PyTorch Softmax(dim=1) on the (B, L, 1) tensor).
    m = jnp.max(logits, axis=-1, keepdims=True)
    e = jnp.exp(logits - m)
    attn = e / jnp.sum(e, axis=-1, keepdims=True)      # (TB, L)

    attn_ref[...] = attn                               # dense (TB, L) store
    out_ref[...] = x * attn[:, None, :]                # broadcast over channel axis


def attention2_forward(x, w, b, *, vmem_budget_bytes=8 << 20):
    """x: (B, C, L) f32; w: (C + L,) fc weight (flattened); b: () fc bias."""
    B, C, L = x.shape
    x = x.astype(jnp.float32)
    wc = w[:C].reshape(C, 1).astype(jnp.float32)            # channel weights
    wp = (w[C:] + b).reshape(1, L).astype(jnp.float32)      # positional weights + bias folded

    # Batch tile: sublane-dense (multiple of 8), capped by a VMEM budget so the
    # double-buffered x/out blocks leave headroom even on v7x (64 MiB VMEM per TC).
    per_row_bytes = 4 * (2 * C * L + L) * 2                 # f32, x+out double-buffered, attn
    tb = max(8, min(512, vmem_budget_bytes // max(per_row_bytes, 1)))
    tb = max(8, (tb // 8) * 8)
    tb = min(tb, _round_up(B, 8))
    Bp = _round_up(B, tb)

    x_p = jnp.pad(x, ((0, Bp - B), (0, 0), (0, 0))) if Bp != B else x

    out_p, attn_p = pl.pallas_call(
        attention2_kernel,
        out_shape=(
            jax.ShapeDtypeStruct((Bp, C, L), jnp.float32),
            jax.ShapeDtypeStruct((Bp, L), jnp.float32),
        ),
        grid_spec=pltpu.PrefetchScalarGridSpec(
            num_scalar_prefetch=0,
            grid=(Bp // tb,),
            in_specs=[
                pl.BlockSpec((tb, C, L), lambda i: (i, 0, 0)),
                pl.BlockSpec((C, 1), lambda i: (0, 0)),
                pl.BlockSpec((1, L), lambda i: (0, 0)),
            ],
            out_specs=[
                pl.BlockSpec((tb, C, L), lambda i: (i, 0, 0)),
                pl.BlockSpec((tb, L), lambda i: (i, 0)),
            ],
        ),
        compiler_params=pltpu.CompilerParams(
            dimension_semantics=("parallel",),
        ),
    )(x_p, wc, wp)

    return out_p[:B], attn_p[:B]


def attention2_reference(x, w, b):
    """Pure-JAX reference mirroring the PyTorch forward."""
    B, C, L = x.shape
    pos = jnp.broadcast_to(jnp.eye(L, dtype=x.dtype), (B, L, L))
    feat = jnp.concatenate([x, pos], axis=1)             # (B, C+L, L)
    feat = jnp.transpose(feat, (0, 2, 1))                # (B, L, C+L)
    logits = feat @ w.reshape(-1, 1) + b                 # (B, L, 1)
    attn = jax.nn.softmax(logits, axis=1)                # softmax over L
    original = jnp.transpose(x, (0, 2, 1))               # (B, L, C)
    out = original * attn                                # (B, L, C)
    out = jnp.transpose(out, (0, 2, 1))                  # (B, C, L)
    return out, attn.reshape(B, L)


if __name__ == "__main__":
    B, C, L = 2, 4, 8  # batch, in_channels, seq_length

    key = jax.random.PRNGKey(0)
    kx, kw, kb = jax.random.split(key, 3)
    x = jax.random.normal(kx, (B, C, L), dtype=jnp.float32)
    # nn.Linear(C + L, 1) parameters, initialized deterministically in-script.
    fan_in = C + L
    bound = 1.0 / (fan_in ** 0.5)
    w = jax.random.uniform(kw, (fan_in,), jnp.float32, -bound, bound)
    b = jax.random.uniform(kb, (), jnp.float32, -bound, bound)

    out, attn = attention2_forward(x, w, b)
    out, attn = jax.block_until_ready(out), jax.block_until_ready(attn)

    out_ref, attn_ref = attention2_reference(x, w, b)
    assert out.shape == (B, C, L) and attn.shape == (B, L)
    assert jnp.allclose(out, out_ref, atol=1e-5, rtol=1e-5)
    assert jnp.allclose(attn, attn_ref, atol=1e-5, rtol=1e-5)

    print("KERNEL_OK")
</pallas_src>

<mosaic_0001>
module attributes {stable_mosaic.version = 11 : i64} {
  func.func @attention2_kernel(%arg0: i32, %arg1: memref<8x4x8xf32, #tpu.memory_space<vmem>>, %arg2: memref<4x1xf32, #tpu.memory_space<vmem>>, %arg3: memref<1x8xf32, #tpu.memory_space<vmem>>, %arg4: memref<8x4x8xf32, #tpu.memory_space<vmem>>, %arg5: memref<8x8xf32, #tpu.memory_space<vmem>>) attributes {dimension_semantics = [#tpu.dimension_semantics<parallel>], iteration_bounds = array<i64: 1>, scalar_prefetch = 0 : i64, scratch_operands = 0 : i64, tpu.core_type = #tpu.core_type<tc>, window_params = [{transform_indices = @transform_0, window_bounds = array<i64: 8, 4, 8>}, {pipeline_mode = #tpu.pipeline_mode<synchronous>, transform_indices = @transform_1, window_bounds = array<i64: 4, 1>}, {pipeline_mode = #tpu.pipeline_mode<synchronous>, transform_indices = @transform_2, window_bounds = array<i64: 1, 8>}, {transform_indices = @transform_3, window_bounds = array<i64: 8, 4, 8>}, {transform_indices = @transform_4, window_bounds = array<i64: 8, 8>}]} {
    %c0 = arith.constant 0 : index
    %c0_0 = arith.constant 0 : index
    %c0_1 = arith.constant 0 : index
    %0 = vector.load %arg1[%c0, %c0_0, %c0_1] : memref<8x4x8xf32, #tpu.memory_space<vmem>>, vector<8x4x8xf32>
    %c0_2 = arith.constant 0 : index
    %c0_3 = arith.constant 0 : index
    %1 = vector.load %arg2[%c0_2, %c0_3] : memref<4x1xf32, #tpu.memory_space<vmem>>, vector<4x1xf32>
    %c0_4 = arith.constant 0 : index
    %c0_5 = arith.constant 0 : index
    %2 = vector.load %arg3[%c0_4, %c0_5] : memref<1x8xf32, #tpu.memory_space<vmem>>, vector<1x8xf32>
    %3 = vector.shape_cast %1 : vector<4x1xf32> to vector<1x4x1xf32>
    %4 = vector.broadcast %3 : vector<1x4x1xf32> to vector<8x4x8xf32>
    %5 = arith.mulf %0, %4 : vector<8x4x8xf32>
    %cst = arith.constant dense<0.000000e+00> : vector<8x8xf32>
    %6 = vector.multi_reduction <add>, %5, %cst [1] : vector<8x4x8xf32> to vector<8x8xf32>
    %7 = vector.broadcast %2 : vector<1x8xf32> to vector<8x8xf32>
    %8 = arith.addf %6, %7 : vector<8x8xf32>
    %cst_6 = arith.constant dense<0xFF800000> : vector<8xf32>
    %9 = vector.multi_reduction <maximumf>, %8, %cst_6 [1] : vector<8x8xf32> to vector<8xf32>
    %10 = vector.shape_cast %9 : vector<8xf32> to vector<8x1xf32>
    %11 = vector.broadcast %10 : vector<8x1xf32> to vector<8x8xf32>
    %12 = arith.subf %8, %11 : vector<8x8xf32>
    %13 = math.exp %12 : vector<8x8xf32>
    %cst_7 = arith.constant dense<0.000000e+00> : vector<8xf32>
    %14 = vector.multi_reduction <add>, %13, %cst_7 [1] : vector<8x8xf32> to vector<8xf32>
    %15 = vector.shape_cast %14 : vector<8xf32> to vector<8x1xf32>
    %16 = vector.broadcast %15 : vector<8x1xf32> to vector<8x8xf32>
    %17 = arith.divf %13, %16 : vector<8x8xf32>
    %c0_8 = arith.constant 0 : index
    %c0_9 = arith.constant 0 : index
    %18 = vector.load %arg5[%c0_8, %c0_9] : memref<8x8xf32, #tpu.memory_space<vmem>>, vector<8x8xf32>
    tpu.vector_store %arg5[%c0_8, %c0_9], %17 {strides = array<i32>} : memref<8x8xf32, #tpu.memory_space<vmem>>, vector<8x8xf32>,
    %19 = vector.shape_cast %17 : vector<8x8xf32> to vector<8x1x8xf32>
    %20 = vector.broadcast %19 : vector<8x1x8xf32> to vector<8x4x8xf32>
    %21 = arith.mulf %0, %20 : vector<8x4x8xf32>
    %c0_10 = arith.constant 0 : index
    %c0_11 = arith.constant 0 : index
    %c0_12 = arith.constant 0 : index
    %22 = vector.load %arg4[%c0_10, %c0_11, %c0_12] : memref<8x4x8xf32, #tpu.memory_space<vmem>>, vector<8x4x8xf32>
    tpu.vector_store %arg4[%c0_10, %c0_11, %c0_12], %21 {strides = array<i32>} : memref<8x4x8xf32, #tpu.memory_space<vmem>>, vector<8x4x8xf32>,
    return
  }
  func.func @transform_0(%arg0: i32) -> (i32, i32, i32) {
    %c0_i32 = arith.constant 0 : i32
    %c0_i32_0 = arith.constant 0 : i32
    %c0_i32_1 = arith.constant 0 : i32
    return %arg0, %c0_i32, %c0_i32_0 : i32, i32, i32
  }
  func.func @transform_1(%arg0: i32) -> (i32, i32) {
    %c0_i32 = arith.constant 0 : i32
    %c0_i32_0 = arith.constant 0 : i32
    %c0_i32_1 = arith.constant 0 : i32
    return %c0_i32, %c0_i32_0 : i32, i32
  }
  func.func @transform_2(%arg0: i32) -> (i32, i32) {
    %c0_i32 = arith.constant 0 : i32
    %c0_i32_0 = arith.constant 0 : i32
    %c0_i32_1 = arith.constant 0 : i32
    return %c0_i32, %c0_i32_0 : i32, i32
  }
  func.func @transform_3(%arg0: i32) -> (i32, i32, i32) {
    %c0_i32 = arith.constant 0 : i32
    %c0_i32_0 = arith.constant 0 : i32
    %c0_i32_1 = arith.constant 0 : i32
    return %arg0, %c0_i32, %c0_i32_0 : i32, i32, i32
  }
  func.func @transform_4(%arg0: i32) -> (i32, i32) {
    %c0_i32 = arith.constant 0 : i32
    %c0_i32_0 = arith.constant 0 : i32
    return %arg0, %c0_i32 : i32, i32
  }
}

</mosaic_0001>

<bundles_post_ra>
// kernel: tpu_custom_call.1
= control target key start
LH: loop header
LB: loop body
LE: loop exit
PB: predicated region body
PF: predicated region fallthrough
CT: control target
= control target key end

     0   :  { %10 = vsyncpa [#allocation3], 0  ;;  %s631_s0 = inlined_call_operand.hbm [shape: f32[8,4,8], index: 0, kind: input, shape index: {}]   ;;  %s632_s1 = inlined_call_operand.vmem [shape: f32[4,1], index: 1, kind: input, shape index: {}]   ;;  %s633_s2 = inlined_call_operand.vmem [shape: f32[1,8], index: 2, kind: input, shape index: {}]   ;;  %s634_s3 = inlined_call_operand.hbm [shape: f32[8,4,8], index: 3, kind: output, shape index: {0}]   ;;  %s635_s4 = inlined_call_operand.hbm [shape: f32[8,8], index: 4, kind: output, shape index: {1}]  }
   0x1   :  { %11 = vsyncpa [#allocation4], 0 }
   0x2   :  { %12 = vsyncpa [#allocation7], 0  ;;  %s473_s15 = smov [#allocation2]   ;;  %s401_s19 = scalar_lea.hbm %s631_s0, 512 }
   0x3   :  { %s18_s16 = sshll.u32 %s473_s15, 4  ;;  %p402_p0 = scmp.ne.s32.totalorder %s631_s0, %s401_s19  ;;  %s19_s16 = int_to_ptr.vmem [resolvable:$true] %s18_s16 }
   0x4   :  { %p405_p1 = scmp.lt.u32.totalorder %s401_s19, %s631_s0 }
   0x6   :  { %p407_p2 = pnand %p405_p1, %p402_p0 }
   0x8   :  { %410 = shalt.err (!%p407_p2)
}
   0x9   :  { %s411_s24 = scalar_lea.vmem %s19_s16, 512  ;;  %p416_p4 = scmp.lt.s32.totalorder %s19_s16, %s19_s16 }
   0xa   :  { %p412_p3 = scmp.ne.s32.totalorder %s19_s16, %s411_s24  ;;  %p417_p5 = scmp.lt.s32.totalorder %s411_s24, %s411_s24 }
   0xc   :  { %p418_p6 = por %p417_p5, %p416_p4 }
   0xe   :  { %p419_p7 = pnand %p418_p6, %p412_p3 }
  0x10   :  { %422 = shalt.err (!%p419_p7)
}
  0x11   :  { %s474_s25 = smov 64   ;;  %s475_s26 = smov 4  }
  0x12   :  { %24 = dma.hbm_to_vmem [thread:$0]  %s631_s0, 512, %s19_s16, [#allocation3], %s474_s25, %s474_s25, %s475_s26  }
  0x13   :  { %467 = dma.done.wait [#allocation3], 512  }
  0x14   :  { %468 = vsyncadd [#allocation3], 4294966784  ;;  %v476_v0 = vmov 0   ;;  %v40_v1 = vld [vmem:[%s632_s1] sm:$0xf]  ;;  %vm55_vm0 = vcmask 60416  }
  0x15   :  { %368 = vset.pattern.permute.xlu0 %v476_v0  ;;  %v522_v2 = vld [vmem:[#allocation2] sm:$0xf]  ;;  %v524_v3 = vld [vmem:[#allocation2 + $0x4] sm:$0xf]  ;;  %v526_v4 = vld [vmem:[#allocation2 + $0x8] sm:$0xf] }
  0x16   :  { %44 = vperm.xlu0 %368, %v40_v1   ;;  %v528_v5 = vld [vmem:[#allocation2 + $0xc] sm:$0xf]  ;;  %v530_v6 = vld [vmem:[#allocation2 + $0x10] sm:$0xf]  ;;  %v532_v7 = vld [vmem:[#allocation2 + $0x14] sm:$0xf] }
  0x17   :  { %v534_v8 = vld [vmem:[#allocation2 + $0x18] sm:$0xf]  ;;  %v536_v9 = vld [vmem:[#allocation2 + $0x1c] sm:$0xf]  ;;  %v361_v59 = vld [vmem:[%s633_s2] ss:$0 sm:$0xff] }
  0x18   :  { %vm135_vm1 = vcmask 1041409   ;;  %vm138_vm2 = vcmask 1042434   ;;  %vm141_vm3 = vcmask 1043459   ;;  %vm144_vm4 = vcmask 1044484   ;;  %s477_s2 = smov [#allocation5]   ;;  %s478_s6 = smov [#allocation6]  }
  0x19   :  { %vm147_vm5 = vcmask 1045509   ;;  %vm150_vm6 = vcmask 1046534   ;;  %vm153_vm7 = vcmask 1047559   ;;  %vm156_vm8 = vcmask 64512   ;;  %s335_s5 = sshll.u32 %s477_s2, 4  ;;  %s348_s7 = sshll.u32 %s478_s6, 4  ;;  %s336_s5 = int_to_ptr.vmem [resolvable:$true] %s335_s5  ;;  %s594_s7 = int_to_ptr.vmem [resolvable:$true] %s348_s7 }
  0x1a   :  { %s423_s8 = scalar_lea.vmem %s336_s5, 512  ;;  %p428_p9 = scmp.lt.s32.totalorder %s336_s5, %s336_s5 }
  0x1b   :  { %p424_p8 = scmp.ne.s32.totalorder %s336_s5, %s423_s8  ;;  %p429_p10 = scmp.lt.s32.totalorder %s423_s8, %s423_s8 }
  0x1d   :  { %p430_p11 = por %p429_p10, %p428_p9 }
  0x1f   :  { %p431_p12 = pnand %p430_p11, %p424_p8 }
  0x95   :  { %v45_v10 = vpop.permute.xlu0 %44 }
  0x96   :  { %v47_v11 = vmul.f32 %v45_v10, %v522_v2  ;;  %v48_v12 = vmul.f32 %v45_v10, %v524_v3  ;;  %v49_v13 = vmul.f32 %v45_v10, %v526_v4  ;;  %v50_v14 = vmul.f32 %v45_v10, %v528_v5 }
  0x97   :  { %v51_v15 = vmul.f32 %v45_v10, %v530_v6  ;;  %v52_v16 = vmul.f32 %v45_v10, %v532_v7  ;;  %v53_v17 = vmul.f32 %v45_v10, %v534_v8  ;;  %v54_v18 = vmul.f32 %v45_v10, %v536_v9 }
  0x98   :  { %v56_v19 = vsel %vm55_vm0, %v47_v11, 0.0  ;;  %v63_v20 = vsel %vm55_vm0, %v48_v12, 0.0  ;;  %v70_v21 = vsel %vm55_vm0, %v49_v13, 0.0  ;;  %v77_v22 = vsel %vm55_vm0, %v50_v14, 0.0 }
  0x99   :  { %v57_v23 = vrot.slane %v56_v19, 4  ;;  %v64_v24 = vrot.slane %v63_v20, 4  ;;  %v71_v25 = vrot.slane %v70_v21, 4  ;;  %v78_v26 = vrot.slane %v77_v22, 4 }
  0x9a   :  { %v84_v27 = vsel %vm55_vm0, %v51_v15, 0.0  ;;  %v91_v28 = vsel %vm55_vm0, %v52_v16, 0.0  ;;  %v98_v29 = vsel %vm55_vm0, %v53_v17, 0.0  ;;  %v105_v30 = vsel %vm55_vm0, %v54_v18, 0.0 }
  0x9b   :  { %v58_v31 = vadd.f32 %v57_v23, %v56_v19  ;;  %v65_v32 = vadd.f32 %v64_v24, %v63_v20  ;;  %v72_v33 = vadd.f32 %v71_v25, %v70_v21  ;;  %v79_v34 = vadd.f32 %v78_v26, %v77_v22 }
  0x9c   :  { %v85_v35 = vrot.slane %v84_v27, 4  ;;  %v92_v36 = vrot.slane %v91_v28, 4  ;;  %v99_v37 = vrot.slane %v98_v29, 4  ;;  %v106_v38 = vrot.slane %v105_v30, 4 }
  0x9d   :  { %v59_v39 = vrot.slane %v58_v31, 2  ;;  %v66_v40 = vrot.slane %v65_v32, 2  ;;  %v73_v41 = vrot.slane %v72_v33, 2  ;;  %v80_v42 = vrot.slane %v79_v34, 2 }
  0x9e   :  { %v86_v43 = vadd.f32 %v85_v35, %v84_v27  ;;  %v93_v44 = vadd.f32 %v92_v36, %v91_v28  ;;  %v100_v45 = vadd.f32 %v99_v37, %v98_v29  ;;  %v107_v46 = vadd.f32 %v106_v38, %v105_v30 }
  0x9f   :  { %v67_v47 = vadd.f32 %v66_v40, %v65_v32  ;;  %v60_v48 = vadd.f32 %v59_v39, %v58_v31  ;;  %v74_v49 = vadd.f32 %v73_v41, %v72_v33  ;;  %v81_v50 = vadd.f32 %v80_v42, %v79_v34 }
  0xa0   :  { %v87_v51 = vrot.slane %v86_v43, 2  ;;  %v94_v52 = vrot.slane %v93_v44, 2  ;;  %v101_v53 = vrot.slane %v100_v45, 2  ;;  %v108_v54 = vrot.slane %v107_v46, 2 }
  0xa1   :  { %v61_v55 = vrot.slane %v60_v48, 1  ;;  %v68_v56 = vrot.slane %v67_v47, 1  ;;  %v75_v57 = vrot.slane %v74_v49, 1  ;;  %v82_v58 = vrot.slane %v81_v50, 1 }
  0xa2   :  { %v88_v60 = vadd.f32 %v87_v51, %v86_v43  ;;  %v95_v61 = vadd.f32 %v94_v52, %v93_v44  ;;  %v102_v62 = vadd.f32 %v101_v53, %v100_v45  ;;  %v109_v63 = vadd.f32 %v108_v54, %v107_v46 }
  0xa3   :  { %v62_v0 = vadd.f32 %v61_v55, %v60_v48  ;;  %v69_v1 = vadd.f32 %v68_v56, %v67_v47  ;;  %v76_v10 = vadd.f32 %v75_v57, %v74_v49  ;;  %v83_v11 = vadd.f32 %v82_v58, %v81_v50 }
  0xa4   :  { %v89_v12 = vrot.slane %v88_v60, 1  ;;  %v96_v13 = vrot.slane %v95_v61, 1  ;;  %v103_v14 = vrot.slane %v102_v62, 1  ;;  %v110_v15 = vrot.slane %v109_v63, 1 }
  0xa5   :  { %v119_v16 = vadd.f32 %v361_v59, %v69_v1  ;;  %v120_v17 = vadd.f32 %v361_v59, %v76_v10  ;;  %v121_v18 = vadd.f32 %v361_v59, %v83_v11  ;;  %v118_v23 = vadd.f32 %v361_v59, %v62_v0 }
  0xa6   :  { %v90_v19 = vadd.f32 %v89_v12, %v88_v60  ;;  %v97_v20 = vadd.f32 %v96_v13, %v95_v61  ;;  %v104_v21 = vadd.f32 %v103_v14, %v102_v62  ;;  %v111_v22 = vadd.f32 %v110_v15, %v109_v63 }
  0xa7   :  { %v134_v24 = vrot.slane %v119_v16, 7  ;;  %v137_v25 = vrot.slane %v120_v17, 6  ;;  %v140_v31 = vrot.slane %v121_v18, 5 }
  0xa8   :  { %v122_v26 = vadd.f32 %v361_v59, %v90_v19  ;;  %v123_v27 = vadd.f32 %v361_v59, %v97_v20  ;;  %v124_v28 = vadd.f32 %v361_v59, %v104_v21  ;;  %v125_v29 = vadd.f32 %v361_v59, %v111_v22 }
  0xa9   :  { %v136_v30 = vsel %vm135_vm1, %v134_v24, %v118_v23 }
  0xaa   :  { %v139_v32 = vsel %vm138_vm2, %v137_v25, %v136_v30  ;;  %v143_v33 = vrot.slane %v122_v26, 4  ;;  %v146_v35 = vrot.slane %v123_v27, 3  ;;  %v149_v37 = vrot.slane %v124_v28, 2 }
  0xab   :  { %v142_v34 = vsel %vm141_vm3, %v140_v31, %v139_v32  ;;  %v152_v39 = vrot.slane %v125_v29, 1 }
  0xac   :  { %v145_v36 = vsel %vm144_vm4, %v143_v33, %v142_v34 }
  0xad   :  { %v148_v38 = vsel %vm147_vm5, %v146_v35, %v145_v36 }
  0xae   :  { %v151_v40 = vsel %vm150_vm6, %v149_v37, %v148_v38 }
  0xaf   :  { %v154_v41 = vsel %vm153_vm7, %v152_v39, %v151_v40  ;;  %v282_v39 = vlaneseq }
  0xb0   :  { %v157_v42 = vsel %vm156_vm8, %v154_v41, -inf }
  0xb1   :  { %158 = vmax.xlane.f32.xlu0 %v157_v42 }
 0x13e   :  { %v159_v43 = vpop.xlane.xlu0 %158 }
 0x13f   :  { %v161_v44 = vrot.slane %v159_v43, 1  ;;  %v162_v45 = vrot.slane %v159_v43, 2  ;;  %v163_v46 = vrot.slane %v159_v43, 3  ;;  %v164_v47 = vrot.slane %v159_v43, 4 }
 0x140   :  { %v165_v48 = vrot.slane %v159_v43, 5  ;;  %v166_v49 = vrot.slane %v159_v43, 6  ;;  %v167_v50 = vrot.slane %v159_v43, 7  ;;  %v176_v51 = vsub.f32 %v118_v23, %v159_v43 }
 0x141   :  { %v177_v52 = vsub.f32 %v119_v16, %v161_v44  ;;  %v178_v53 = vsub.f32 %v120_v17, %v162_v45  ;;  %v179_v54 = vsub.f32 %v121_v18, %v163_v46  ;;  %v180_v55 = vsub.f32 %v122_v26, %v164_v47 }
 0x142   :  { %v181_v56 = vsub.f32 %v123_v27, %v165_v48  ;;  %v182_v57 = vsub.f32 %v124_v28, %v166_v49  ;;  %v184_v58 = vmul.f32 1.442695, %v176_v51  ;;  %v183_v62 = vsub.f32 %v125_v29, %v167_v50 }
 0x143   :  { %v186_v59 = vmul.f32 1.442695, %v177_v52  ;;  %v188_v60 = vmul.f32 1.442695, %v178_v53  ;;  %v190_v61 = vmul.f32 1.442695, %v179_v54 }
 0x144   :  { %369 = vpow2.f32 %v184_v58  ;;  %v192_v63 = vmul.f32 1.442695, %v180_v55  ;;  %v194_v0 = vmul.f32 1.442695, %v181_v56  ;;  %v196_v1 = vmul.f32 1.442695, %v182_v57 }
 0x145   :  { %371 = vpow2.f32 %v186_v59  ;;  %v198_v10 = vmul.f32 1.442695, %v183_v62  ;;  %v283_v43 = vshrl.u32 %v282_v39, 7 }
 0x146   :  { %373 = vpow2.f32 %v188_v60 }
 0x147   :  { %375 = vpow2.f32 %v190_v61  ;;  %v284_v44 = vsub.s32 0, %v283_v43 }
 0x148   :  { %377 = vpow2.f32 %v192_v63 }
 0x149   :  { %379 = vpow2.f32 %v194_v0 }
 0x14a   :  { %381 = vpow2.f32 %v196_v1 }
 0x14b   :  { %383 = vpow2.f32 %v198_v10 }
 0x14e   :  { %v370_v11 = vpop.eup %369 }
 0x14f   :  { %v372_v12 = vpop.eup %371 }
 0x150   :  { %v374_v13 = vpop.eup %373  ;;  %v208_v14 = vrot.slane %v372_v12, 7 }
 0x151   :  { %v376_v15 = vpop.eup %375  ;;  %v210_v16 = vrot.slane %v374_v13, 6 }
 0x152   :  { %v378_v17 = vpop.eup %377  ;;  %v209_v18 = vsel %vm135_vm1, %v208_v14, %v370_v11  ;;  %v212_v19 = vrot.slane %v376_v15, 5 }
 0x153   :  { %v380_v20 = vpop.eup %379  ;;  %v211_v21 = vsel %vm138_vm2, %v210_v16, %v209_v18  ;;  %v214_v22 = vrot.slane %v378_v17, 4 }
 0x154   :  { %v382_v23 = vpop.eup %381  ;;  %v213_v24 = vsel %vm141_vm3, %v212_v19, %v211_v21  ;;  %v216_v25 = vrot.slane %v380_v20, 3 }
 0x155   :  { %v384_v26 = vpop.eup %383  ;;  %v215_v27 = vsel %vm144_vm4, %v214_v22, %v213_v24  ;;  %v218_v28 = vrot.slane %v382_v23, 2 }
 0x156   :  { %v217_v29 = vsel %vm147_vm5, %v216_v25, %v215_v27  ;;  %v220_v30 = vrot.slane %v384_v26, 1 }
 0x157   :  { %v219_v31 = vsel %vm150_vm6, %v218_v28, %v217_v29 }
 0x158   :  { %v221_v32 = vsel %vm153_vm7, %v220_v30, %v219_v31 }
 0x159   :  { %v223_v33 = vsel %vm156_vm8, %v221_v32, 0.0 }
 0x15a   :  { %224 = vadd.xlane.f32.xlu1 %v223_v33 }
 0x1e7   :  { %v225_v34 = vpop.xlane.xlu1 %224 }
 0x1e8   :  { %v227_v35 = vrot.slane %v225_v34, 1  ;;  %v228_v36 = vrot.slane %v225_v34, 2  ;;  %v229_v37 = vrot.slane %v225_v34, 3  ;;  %v230_v38 = vrot.slane %v225_v34, 4 }
 0x1e9   :  { %385 = vrcp.f32 %v225_v34  ;;  %v231_v40 = vrot.slane %v225_v34, 5  ;;  %v232_v41 = vrot.slane %v225_v34, 6  ;;  %v233_v42 = vrot.slane %v225_v34, 7 }
 0x1ea   :  { %387 = vrcp.f32 %v227_v35 }
 0x1eb   :  { %389 = vrcp.f32 %v228_v36 }
 0x1ec   :  { %391 = vrcp.f32 %v229_v37 }
 0x1ed   :  { %393 = vrcp.f32 %v230_v38 }
 0x1ee   :  { %395 = vrcp.f32 %v231_v40 }
 0x1ef   :  { %397 = vrcp.f32 %v232_v41 }
 0x1f0   :  { %399 = vrcp.f32 %v233_v42 }
 0x1f3   :  { %v386_v45 = vpop.eup %385 }
 0x1f4   :  { %v388_v46 = vpop.eup %387  ;;  %v243_v47 = vmul.f32 %v386_v45, %v370_v11 }
 0x1f5   :  { %v390_v48 = vpop.eup %389  ;;  %v245_v49 = vmul.f32 %v388_v46, %v372_v12 }
 0x1f6   :  { %v392_v50 = vpop.eup %391  ;;  %v247_v51 = vmul.f32 %v390_v48, %v374_v13  ;;  %v285_v52 = vrot.slane %v243_v47, %v284_v44 }
 0x1f7   :  { %v394_v53 = vpop.eup %393  ;;  %v249_v54 = vmul.f32 %v392_v50, %v376_v15  ;;  %v289_v55 = vrot.slane %v245_v49, %v284_v44  ;;  %v266_v56 = vrot.slane %v245_v49, 7 }
 0x1f8   :  { %v396_v57 = vpop.eup %395  ;;  %v251_v58 = vmul.f32 %v394_v53, %v378_v17  ;;  %v293_v59 = vrot.slane %v247_v51, %v284_v44  ;;  %v314_v60 = vmul.f32 %v285_v52, %v522_v2  ;;  %v268_v61 = vrot.slane %v247_v51, 6 }
 0x1f9   :  { %v398_v62 = vpop.eup %397  ;;  %v253_v63 = vmul.f32 %v396_v57, %v380_v20  ;;  %v297_v0 = vrot.slane %v249_v54, %v284_v44  ;;  %v315_v1 = vmul.f32 %v289_v55, %v524_v3  ;;  %v267_v10 = vsel %vm135_vm1, %v266_v56, %v243_v47 }
 0x1fa   :  { %v400_v11 = vpop.eup %399  ;;  %v255_v12 = vmul.f32 %v398_v62, %v382_v23  ;;  %v301_v13 = vrot.slane %v251_v58, %v284_v44  ;;  %v316_v14 = vmul.f32 %v293_v59, %v526_v4  ;;  %322 = vst.msk [vmem:[#allocation5] sm:$0xf] %vm55_vm0, %v314_v60  ;;  %v269_v15 = vsel %vm138_vm2, %v268_v61, %v267_v10 }
 0x1fb   :  { %v257_v16 = vmul.f32 %v400_v11, %v384_v26  ;;  %v305_v17 = vrot.slane %v253_v63, %v284_v44  ;;  %v317_v2 = vmul.f32 %v297_v0, %v528_v5  ;;  %323 = vst.msk [vmem:[#allocation5 + $0x4] sm:$0xf] %vm55_vm0, %v315_v1  ;;  %v270_v18 = vrot.slane %v249_v54, 5 }
 0x1fc   :  { %v309_v19 = vrot.slane %v255_v12, %v284_v44  ;;  %v318_v3 = vmul.f32 %v301_v13, %v530_v6  ;;  %324 = vst.msk [vmem:[#allocation5 + $0x8] sm:$0xf] %vm55_vm0, %v316_v14  ;;  %v272_v20 = vrot.slane %v251_v58, 4  ;;  %v274_v23 = vrot.slane %v253_v63, 3 }
 0x1fd   :  { %v313_v4 = vrot.slane %v257_v16, %v284_v44  ;;  %v319_v21 = vmul.f32 %v305_v17, %v532_v7  ;;  %325 = vst.msk [vmem:[#allocation5 + $0xc] sm:$0xf] %vm55_vm0, %v317_v2  ;;  %v271_v22 = vsel %vm141_vm3, %v270_v18, %v269_v15  ;;  %v276_v24 = vrot.slane %v255_v12, 2 }
 0x1fe   :  { %v320_v5 = vmul.f32 %v309_v19, %v534_v8  ;;  %326 = vst.msk [vmem:[#allocation5 + $0x10] sm:$0xf] %vm55_vm0, %v318_v3  ;;  %v273_v6 = vsel %vm144_vm4, %v272_v20, %v271_v22  ;;  %v278_v26 = vrot.slane %v257_v16, 1 }
 0x1ff   :  { %v321_v25 = vmul.f32 %v313_v4, %v536_v9  ;;  %327 = vst.msk [vmem:[#allocation5 + $0x14] sm:$0xf] %vm55_vm0, %v319_v21  ;;  %v275_v7 = vsel %vm147_vm5, %v274_v23, %v273_v6 }
 0x200   :  { %328 = vst.msk [vmem:[#allocation5 + $0x18] sm:$0xf] %vm55_vm0, %v320_v5  ;;  %v277_v27 = vsel %vm150_vm6, %v276_v24, %v275_v7 }
 0x201   :  { %329 = vst.msk [vmem:[#allocation5 + $0x1c] sm:$0xf] %vm55_vm0, %v321_v25  ;;  %v279_v8 = vsel %vm153_vm7, %v278_v26, %v277_v27 }
 0x202   :  { %434 = shalt.err (!%p431_p12)
}
 0x203   :  { %s435_s11 = scalar_lea.hbm %s634_s3, 512 }
 0x204   :  { %p436_p13 = scmp.ne.s32.totalorder %s634_s3, %s435_s11  ;;  %p439_p0 = scmp.lt.u32.totalorder %s435_s11, %s634_s3 }
 0x206   :  { %p441_p1 = pnand %p439_p0, %p436_p13 }
 0x208   :  { %444 = shalt.err (!%p441_p1)
}
 0x209   :  { %341 = dma.vmem_to_hbm [thread:$0]  %s336_s5, 512, %s634_s3, [#allocation4], %s474_s25, %s474_s25, %s475_s26   ;;  %281 = vst.msk [vmem:[#allocation6] sm:$0xff] %vm156_vm8, %v279_v8 }
 0x20a   :  { %s445_s18 = scalar_lea.vmem %s594_s7, 128  ;;  %p450_p3 = scmp.lt.s32.totalorder %s594_s7, %s594_s7 }
 0x20b   :  { %p446_p2 = scmp.ne.s32.totalorder %s594_s7, %s445_s18  ;;  %p451_p4 = scmp.lt.s32.totalorder %s445_s18, %s445_s18 }
 0x20d   :  { %p452_p5 = por %p451_p4, %p450_p3 }
 0x20f   :  { %p453_p6 = pnand %p452_p5, %p446_p2 }
 0x211   :  { %456 = shalt.err (!%p453_p6)
}
 0x212   :  { %s457_s21 = scalar_lea.hbm %s635_s4, 128 }
 0x213   :  { %p458_p7 = scmp.ne.s32.totalorder %s635_s4, %s457_s21  ;;  %p461_p8 = scmp.lt.u32.totalorder %s457_s21, %s635_s4 }
 0x215   :  { %p463_p9 = pnand %p461_p8, %p458_p7 }
 0x217   :  { %466 = shalt.err (!%p463_p9)
}
 0x218   :  { %351 = dma.vmem_to_hbm [thread:$0]  %s594_s7, 128, %s635_s4, [#allocation7]  }
 0x219   :  { %469 = dma.done.wait [#allocation4], 512  }
 0x21a   :  { %470 = vsyncadd [#allocation4], 4294966784 }
 0x21b   :  { %471 = dma.done.wait [#allocation7], 128  }
 0x21c   :  { %472 = vsyncadd [#allocation7], 4294967168 }
 0x21d   :  { %358 = vsyncpa [#allocation3], 1 }
 0x21e   :  { %359 = vsyncpa [#allocation4], 1 }
 0x21f   :  { %360 = vsyncpa [#allocation7], 1 }

</bundles_post_ra>
